<compile_context>
chip_gen: v7x
topology: tpu7x:2x2x1
jax: 0.10.0
libtpu: 0.0.40
codegen_flags: <defaults>
</compile_context>

<pallas_src>
import jax
import jax.numpy as jnp
from jax.experimental import pallas as pl
from jax.experimental.pallas import tpu as pltpu

# ----- small synthetic config (mirrors the module's defaults, shrunk) -----
B, T = 2, 4                       # batch, temporal seq_len
H = W = 32                        # frame spatial size
C_IN = 3                          # RGB
PATCH = 8                         # downsample factor -> 4x4 feature map
FH, FW = H // PATCH, W // PATCH   # feature_map_spatial_shape == (4, 4)
RESNET_DIM = 64                   # stand-in for resnet_dimension (ResNet50 = 2048)
POS_EMB_LEN = 48                  # position_emb_len
MODEL_DIM = 128                   # model_dimension
MID_DIM = RESNET_DIM // 2
S = T * FH * FW                   # spatial_temporal_seq_len (= 64)
D_IN = RESNET_DIM + POS_EMB_LEN
BN_EPS = 1e-5
K_PATCH = PATCH * PATCH * C_IN    # per-patch contraction length (= 192)


# ------------------------------ fused kernel ------------------------------
def _fused_kernel(vr_ref, wc_ref, w1_ref, b1_ref, g_ref, bt_ref,
                  w2_ref, b2_ref, o_ref):
    bb, s, kp = vr_ref.shape
    x = vr_ref[...].reshape(bb * s, kp)                       # bf16 rows (b,t,fh,fw)

    # (1) patch-embedding backbone stand-in: (B*S, 192) x (192, RESNET_DIM).
    # TODO(synk): pretrained ResNet-50 backbone replaced by a single patch-embedding conv.
    feat = jnp.dot(x, wc_ref[...], preferred_element_type=jnp.float32)

    # (2) first Linear of feature_mlp.  Positional embedding + conv bias are
    #     pre-folded into the per-position bias b1 (S, MID).
    h = jnp.dot(feat.astype(jnp.bfloat16), w1_ref[...],
                preferred_element_type=jnp.float32)
    h = h.reshape(bb, s, MID_DIM) + b1_ref[...][None]          # (B, S, MID) f32
    # TODO(synk): nn.Dropout implemented as eval-mode identity (training dropout is stochastic).

    # (3) BatchNorm1d(num_features=S): per sequence-position stats over
    #     (batch, MID) -- two-pass (centered) in f32, no MXU involvement.
    # TODO(synk): training-mode batch statistics; eval mode would use running_mean/var.
    inv_cnt = 1.0 / float(bb * MID_DIM)
    mean = jnp.sum(jnp.sum(h, axis=0), axis=-1, keepdims=True) * inv_cnt   # (S, 1)
    hc = h - mean[None]
    var = jnp.sum(jnp.sum(hc * hc, axis=0), axis=-1, keepdims=True) * inv_cnt
    scale = g_ref[...] * jax.lax.rsqrt(var + BN_EPS)                       # (S, 1)

    # (4) ReLU + second Linear -> lane-dense (B*S, MODEL_DIM).
    hr = jnp.maximum(hc * scale[None] + bt_ref[...][None], 0.0)
    out = jnp.dot(hr.reshape(bb * s, MID_DIM).astype(jnp.bfloat16), w2_ref[...],
                  preferred_element_type=jnp.float32) + b2_ref[...]
    o_ref[...] = out.reshape(bb, s, MODEL_DIM).astype(o_ref.dtype)


# ------------------------------ JAX wrapper ------------------------------
def video_feature_model(v, params):
    b = v.shape[0]
    # One-time patch-major repack (tiny HBM copy, halved by the bf16 cast):
    # rows = (b, t, fh, fw), cols = (ph, pw, c).
    vr = (v.astype(jnp.bfloat16)
           .reshape(b, T, FH, PATCH, FW, PATCH, C_IN)
           .transpose(0, 1, 2, 4, 3, 5, 6)
           .reshape(b, S, K_PATCH))
    true_macs = K_PATCH * RESNET_DIM + RESNET_DIM * MID_DIM + MID_DIM * MODEL_DIM
    flops = 2 * b * S * true_macs
    bytes_acc = (b * S * K_PATCH * 2 + b * S * MODEL_DIM * 4
                 + true_macs * 2
                 + (S * MID_DIM + 2 * S + MODEL_DIM) * 4)
    out = pl.pallas_call(
        _fused_kernel,
        out_shape=jax.ShapeDtypeStruct((b, S, MODEL_DIM), jnp.float32),
        grid=(1,),
        in_specs=[
            pl.BlockSpec((b, S, K_PATCH), lambda i: (0, 0, 0)),      # video patches (bf16)
            pl.BlockSpec((K_PATCH, RESNET_DIM), lambda i: (0, 0)),   # conv weight (bf16)
            pl.BlockSpec((RESNET_DIM, MID_DIM), lambda i: (0, 0)),   # linear1 weight (bf16)
            pl.BlockSpec((S, MID_DIM), lambda i: (0, 0)),            # folded bias1 (per-s, f32)
            pl.BlockSpec((S, 1), lambda i: (0, 0)),                  # gamma
            pl.BlockSpec((S, 1), lambda i: (0, 0)),                  # beta
            pl.BlockSpec((MID_DIM, MODEL_DIM), lambda i: (0, 0)),    # linear2 weight (bf16)
            pl.BlockSpec((1, MODEL_DIM), lambda i: (0, 0)),          # linear2 bias
        ],
        out_specs=pl.BlockSpec((b, S, MODEL_DIM), lambda i: (0, 0, 0)),
        compiler_params=pltpu.CompilerParams(dimension_semantics=("arbitrary",)),
        cost_estimate=pl.CostEstimate(flops=flops, transcendentals=S,
                                      bytes_accessed=bytes_acc),
    )(vr, params["wc"], params["w1"], params["bias1"],
      params["gamma"], params["beta"], params["w2"], params["b2"])
    return out                                   # already (B, S, MODEL_DIM)


# ------------------------- parameter preparation -------------------------
def _sinusoid(n, dim):
    pos = jnp.arange(n, dtype=jnp.float32)[:, None]
    k = jnp.arange(dim // 2, dtype=jnp.float32)[None, :]
    inv = jnp.exp(-jnp.log(10000.0) * (2.0 * k) / dim)
    ang = pos * inv
    return jnp.concatenate([jnp.sin(ang), jnp.cos(ang)], axis=-1)


def _position_embedding():
    # TODO(synk): position_embed_3d is external to the module; implemented as a
    # sinusoidal 3-D (t, h, w) embedding of total length POS_EMB_LEN.
    per = POS_EMB_LEN // 3
    pt = jnp.broadcast_to(_sinusoid(T, per)[:, None, None, :], (T, FH, FW, per))
    ph = jnp.broadcast_to(_sinusoid(FH, per)[None, :, None, :], (T, FH, FW, per))
    pw = jnp.broadcast_to(_sinusoid(FW, per)[None, None, :, :], (T, FH, FW, per))
    return jnp.concatenate([pt, ph, pw], axis=-1).reshape(S, POS_EMB_LEN)


def prepare_params(p):
    """One-time, batch-invariant repacking of module weights into kernel layout."""
    w1a = p["w1"][:RESNET_DIM]                       # acts on backbone features
    w1b = p["w1"][RESNET_DIM:]                       # acts on the positional embedding
    # Fold positional embedding and conv bias into the first Linear's bias.
    pe = _position_embedding()                       # (S, POS_EMB_LEN)
    bias1 = p["b1"][None, :] + pe @ w1b + (p["conv_b"] @ w1a)[None, :]   # (S, MID)
    return dict(
        wc=p["conv_w"].astype(jnp.bfloat16),         # (K_PATCH, RESNET_DIM), rows (ph, pw, c)
        w1=w1a.astype(jnp.bfloat16),                 # (RESNET_DIM, MID)
        w2=p["w2"].astype(jnp.bfloat16),             # (MID, MODEL_DIM)
        bias1=bias1,                                 # (S, MID) f32
        gamma=p["gamma"].reshape(S, 1),
        beta=p["beta"].reshape(S, 1),
        b2=p["b2"].reshape(1, MODEL_DIM),
    )


def init_params(key):
    ks = jax.random.split(key, 3)
    conv_w = 0.02 * jax.random.normal(ks[0], (K_PATCH, RESNET_DIM), jnp.float32)
    conv_b = jnp.zeros((RESNET_DIM,), jnp.float32)
    w1 = jax.random.normal(ks[1], (D_IN, MID_DIM), jnp.float32) / jnp.sqrt(
        jnp.float32(D_IN))
    b1 = jnp.zeros((MID_DIM,), jnp.float32)
    gamma = jnp.ones((S,), jnp.float32)
    beta = jnp.zeros((S,), jnp.float32)
    w2 = jax.random.normal(ks[2], (MID_DIM, MODEL_DIM), jnp.float32) / jnp.sqrt(
        jnp.float32(MID_DIM))
    b2 = jnp.zeros((MODEL_DIM,), jnp.float32)
    return prepare_params(dict(conv_w=conv_w, conv_b=conv_b, w1=w1, b1=b1,
                               gamma=gamma, beta=beta, w2=w2, b2=b2))


if __name__ == "__main__":
    key = jax.random.PRNGKey(0)
    k_param, k_data = jax.random.split(key)
    params = init_params(k_param)
    v = jax.random.normal(k_data, (B, T, H, W, C_IN), jnp.float32)

    fwd = jax.jit(video_feature_model)
    out = fwd(v, params)
    jax.block_until_ready(out)
    assert out.shape == (B, S, MODEL_DIM), out.shape
    assert out.dtype == jnp.float32
    assert bool(jnp.isfinite(out).all())
    print("KERNEL_OK")
</pallas_src>

<mosaic_0001>
module attributes {stable_mosaic.version = 11 : i64} {
  func.func @_fused_kernel(%arg0: i32, %arg1: memref<2x64x192xbf16, #tpu.memory_space<vmem>>, %arg2: memref<192x64xbf16, #tpu.memory_space<vmem>>, %arg3: memref<64x32xbf16, #tpu.memory_space<vmem>>, %arg4: memref<64x32xf32, #tpu.memory_space<vmem>>, %arg5: memref<64x1xf32, #tpu.memory_space<vmem>>, %arg6: memref<64x1xf32, #tpu.memory_space<vmem>>, %arg7: memref<32x128xbf16, #tpu.memory_space<vmem>>, %arg8: memref<1x128xf32, #tpu.memory_space<vmem>>, %arg9: memref<2x64x128xf32, #tpu.memory_space<vmem>>) attributes {dimension_semantics = [#tpu.dimension_semantics<arbitrary>], iteration_bounds = array<i64: 1>, scalar_prefetch = 0 : i64, scratch_operands = 0 : i64, tpu.core_type = #tpu.core_type<tc>, window_params = [{pipeline_mode = #tpu.pipeline_mode<synchronous>, transform_indices = @transform_0, window_bounds = array<i64: 2, 64, 192>}, {pipeline_mode = #tpu.pipeline_mode<synchronous>, transform_indices = @transform_1, window_bounds = array<i64: 192, 64>}, {pipeline_mode = #tpu.pipeline_mode<synchronous>, transform_indices = @transform_2, window_bounds = array<i64: 64, 32>}, {pipeline_mode = #tpu.pipeline_mode<synchronous>, transform_indices = @transform_3, window_bounds = array<i64: 64, 32>}, {pipeline_mode = #tpu.pipeline_mode<synchronous>, transform_indices = @transform_4, window_bounds = array<i64: 64, 1>}, {pipeline_mode = #tpu.pipeline_mode<synchronous>, transform_indices = @transform_5, window_bounds = array<i64: 64, 1>}, {pipeline_mode = #tpu.pipeline_mode<synchronous>, transform_indices = @transform_6, window_bounds = array<i64: 32, 128>}, {pipeline_mode = #tpu.pipeline_mode<synchronous>, transform_indices = @transform_7, window_bounds = array<i64: 1, 128>}, {pipeline_mode = #tpu.pipeline_mode<synchronous>, transform_indices = @transform_8, window_bounds = array<i64: 2, 64, 128>}]} {
    %c0 = arith.constant 0 : index
    %c0_0 = arith.constant 0 : index
    %c0_1 = arith.constant 0 : index
    %0 = vector.load %arg1[%c0, %c0_0, %c0_1] : memref<2x64x192xbf16, #tpu.memory_space<vmem>>, vector<2x64x192xbf16>
    %1 = vector.shape_cast %0 : vector<2x64x192xbf16> to vector<128x192xbf16>
    %c0_2 = arith.constant 0 : index
    %c0_3 = arith.constant 0 : index
    %2 = vector.load %arg2[%c0_2, %c0_3] : memref<192x64xbf16, #tpu.memory_space<vmem>>, vector<192x64xbf16>
    %cst = arith.constant dense<0.000000e+00> : vector<128x64xf32>
    %3 = tpu.matmul %1, %2, %cst {dimension_numbers = #tpu.dot_dimension_numbers<[1], [0], [0], [1], [0, 0, 1, 1], [], []>} : vector<128x192xbf16>, vector<192x64xbf16>, vector<128x64xf32> -> vector<128x64xf32>
    %4 = arith.truncf %3 : vector<128x64xf32> to vector<128x64xbf16>
    %c0_4 = arith.constant 0 : index
    %c0_5 = arith.constant 0 : index
    %5 = vector.load %arg3[%c0_4, %c0_5] : memref<64x32xbf16, #tpu.memory_space<vmem>>, vector<64x32xbf16>
    %cst_6 = arith.constant dense<0.000000e+00> : vector<128x32xf32>
    %6 = tpu.matmul %4, %5, %cst_6 {dimension_numbers = #tpu.dot_dimension_numbers<[1], [0], [0], [1], [0, 0, 1, 1], [], []>} : vector<128x64xbf16>, vector<64x32xbf16>, vector<128x32xf32> -> vector<128x32xf32>
    %7 = vector.shape_cast %6 : vector<128x32xf32> to vector<2x64x32xf32>
    %c0_7 = arith.constant 0 : index
    %c0_8 = arith.constant 0 : index
    %8 = vector.load %arg4[%c0_7, %c0_8] : memref<64x32xf32, #tpu.memory_space<vmem>>, vector<64x32xf32>
    %9 = vector.shape_cast %8 : vector<64x32xf32> to vector<1x64x32xf32>
    %10 = vector.broadcast %9 : vector<1x64x32xf32> to vector<2x64x32xf32>
    %11 = arith.addf %7, %10 : vector<2x64x32xf32>
    %cst_9 = arith.constant dense<0.000000e+00> : vector<64x32xf32>
    %12 = vector.multi_reduction <add>, %11, %cst_9 [0] : vector<2x64x32xf32> to vector<64x32xf32>
    %cst_10 = arith.constant dense<0.000000e+00> : vector<64xf32>
    %13 = vector.multi_reduction <add>, %12, %cst_10 [1] : vector<64x32xf32> to vector<64xf32>
    %14 = vector.shape_cast %13 : vector<64xf32> to vector<64x1xf32>
    %cst_11 = arith.constant 1.562500e-02 : f32
    %15 = vector.broadcast %cst_11 : f32 to vector<64x1xf32>
    %16 = arith.mulf %14, %15 : vector<64x1xf32>
    %17 = vector.shape_cast %16 : vector<64x1xf32> to vector<1x64x1xf32>
    %18 = vector.broadcast %17 : vector<1x64x1xf32> to vector<2x64x32xf32>
    %19 = arith.subf %11, %18 : vector<2x64x32xf32>
    %20 = arith.mulf %19, %19 : vector<2x64x32xf32>
    %cst_12 = arith.constant dense<0.000000e+00> : vector<64x32xf32>
    %21 = vector.multi_reduction <add>, %20, %cst_12 [0] : vector<2x64x32xf32> to vector<64x32xf32>
    %cst_13 = arith.constant dense<0.000000e+00> : vector<64xf32>
    %22 = vector.multi_reduction <add>, %21, %cst_13 [1] : vector<64x32xf32> to vector<64xf32>
    %23 = vector.shape_cast %22 : vector<64xf32> to vector<64x1xf32>
    %cst_14 = arith.constant 1.562500e-02 : f32
    %24 = vector.broadcast %cst_14 : f32 to vector<64x1xf32>
    %25 = arith.mulf %23, %24 : vector<64x1xf32>
    %c0_15 = arith.constant 0 : index
    %c0_16 = arith.constant 0 : index
    %26 = vector.load %arg5[%c0_15, %c0_16] : memref<64x1xf32, #tpu.memory_space<vmem>>, vector<64x1xf32>
    %cst_17 = arith.constant 9.99999974E-6 : f32
    %27 = vector.broadcast %cst_17 : f32 to vector<64x1xf32>
    %28 = arith.addf %25, %27 : vector<64x1xf32>
    %29 = math.rsqrt %28 : vector<64x1xf32>
    %30 = arith.mulf %26, %29 : vector<64x1xf32>
    %31 = vector.shape_cast %30 : vector<64x1xf32> to vector<1x64x1xf32>
    %32 = vector.broadcast %31 : vector<1x64x1xf32> to vector<2x64x32xf32>
    %33 = arith.mulf %19, %32 : vector<2x64x32xf32>
    %c0_18 = arith.constant 0 : index
    %c0_19 = arith.constant 0 : index
    %34 = vector.load %arg6[%c0_18, %c0_19] : memref<64x1xf32, #tpu.memory_space<vmem>>, vector<64x1xf32>
    %35 = vector.shape_cast %34 : vector<64x1xf32> to vector<1x64x1xf32>
    %36 = vector.broadcast %35 : vector<1x64x1xf32> to vector<2x64x32xf32>
    %37 = arith.addf %33, %36 : vector<2x64x32xf32>
    %cst_20 = arith.constant 0.000000e+00 : f32
    %38 = vector.broadcast %cst_20 : f32 to vector<2x64x32xf32>
    %39 = arith.maximumf %37, %38 : vector<2x64x32xf32>
    %40 = vector.shape_cast %39 : vector<2x64x32xf32> to vector<128x32xf32>
    %41 = arith.truncf %40 : vector<128x32xf32> to vector<128x32xbf16>
    %c0_21 = arith.constant 0 : index
    %c0_22 = arith.constant 0 : index
    %42 = vector.load %arg7[%c0_21, %c0_22] : memref<32x128xbf16, #tpu.memory_space<vmem>>, vector<32x128xbf16>
    %cst_23 = arith.constant dense<0.000000e+00> : vector<128x128xf32>
    %43 = tpu.matmul %41, %42, %cst_23 {dimension_numbers = #tpu.dot_dimension_numbers<[1], [0], [0], [1], [0, 0, 1, 1], [], []>} : vector<128x32xbf16>, vector<32x128xbf16>, vector<128x128xf32> -> vector<128x128xf32>
    %c0_24 = arith.constant 0 : index
    %c0_25 = arith.constant 0 : index
    %44 = vector.load %arg8[%c0_24, %c0_25] : memref<1x128xf32, #tpu.memory_space<vmem>>, vector<1x128xf32>
    %45 = vector.broadcast %44 : vector<1x128xf32> to vector<128x128xf32>
    %46 = arith.addf %43, %45 : vector<128x128xf32>
    %47 = vector.shape_cast %46 : vector<128x128xf32> to vector<2x64x128xf32>
    %c0_26 = arith.constant 0 : index
    %c0_27 = arith.constant 0 : index
    %c0_28 = arith.constant 0 : index
    %48 = vector.load %arg9[%c0_26, %c0_27, %c0_28] : memref<2x64x128xf32, #tpu.memory_space<vmem>>, vector<2x64x128xf32>
    tpu.vector_store %arg9[%c0_26, %c0_27, %c0_28], %47 {strides = array<i32>} : memref<2x64x128xf32, #tpu.memory_space<vmem>>, vector<2x64x128xf32>,
    return
  }
  func.func @transform_0(%arg0: i32) -> (i32, i32, i32) {
    %c0_i32 = arith.constant 0 : i32
    %c0_i32_0 = arith.constant 0 : i32
    %c0_i32_1 = arith.constant 0 : i32
    %c0_i32_2 = arith.constant 0 : i32
    return %c0_i32, %c0_i32_0, %c0_i32_1 : i32, i32, i32
  }
  func.func @transform_1(%arg0: i32) -> (i32, i32) {
    %c0_i32 = arith.constant 0 : i32
    %c0_i32_0 = arith.constant 0 : i32
    %c0_i32_1 = arith.constant 0 : i32
    return %c0_i32, %c0_i32_0 : i32, i32
  }
  func.func @transform_2(%arg0: i32) -> (i32, i32) {
    %c0_i32 = arith.constant 0 : i32
    %c0_i32_0 = arith.constant 0 : i32
    %c0_i32_1 = arith.constant 0 : i32
    return %c0_i32, %c0_i32_0 : i32, i32
  }
  func.func @transform_3(%arg0: i32) -> (i32, i32) {
    %c0_i32 = arith.constant 0 : i32
    %c0_i32_0 = arith.constant 0 : i32
    %c0_i32_1 = arith.constant 0 : i32
    return %c0_i32, %c0_i32_0 : i32, i32
  }
  func.func @transform_4(%arg0: i32) -> (i32, i32) {
    %c0_i32 = arith.constant 0 : i32
    %c0_i32_0 = arith.constant 0 : i32
    %c0_i32_1 = arith.constant 0 : i32
    return %c0_i32, %c0_i32_0 : i32, i32
  }
  func.func @transform_5(%arg0: i32) -> (i32, i32) {
    %c0_i32 = arith.constant 0 : i32
    %c0_i32_0 = arith.constant 0 : i32
    %c0_i32_1 = arith.constant 0 : i32
    return %c0_i32, %c0_i32_0 : i32, i32
  }
  func.func @transform_6(%arg0: i32) -> (i32, i32) {
    %c0_i32 = arith.constant 0 : i32
    %c0_i32_0 = arith.constant 0 : i32
    %c0_i32_1 = arith.constant 0 : i32
    return %c0_i32, %c0_i32_0 : i32, i32
  }
  func.func @transform_7(%arg0: i32) -> (i32, i32) {
    %c0_i32 = arith.constant 0 : i32
    %c0_i32_0 = arith.constant 0 : i32
    %c0_i32_1 = arith.constant 0 : i32
    return %c0_i32, %c0_i32_0 : i32, i32
  }
  func.func @transform_8(%arg0: i32) -> (i32, i32, i32) {
    %c0_i32 = arith.constant 0 : i32
    %c0_i32_0 = arith.constant 0 : i32
    %c0_i32_1 = arith.constant 0 : i32
    %c0_i32_2 = arith.constant 0 : i32
    return %c0_i32, %c0_i32_0, %c0_i32_1 : i32, i32, i32
  }
}

</mosaic_0001>

<bundles_post_ra>
// kernel: video_feature_model.1
= control target key start
LH: loop header
LB: loop body
LE: loop exit
PB: predicated region body
PF: predicated region fallthrough
CT: control target
= control target key end

     0   :  { %v1232_v1 = vmov 0   ;;  %vm215_vm0 = vcmask 523264   ;;  %s1686_s0 = inlined_call_operand.vmem [shape: bf16[2,64,192], index: 0, kind: input, shape index: {}]   ;;  %s1687_s1 = inlined_call_operand.vmem [shape: bf16[192,64], index: 1, kind: input, shape index: {}]   ;;  %s1688_s2 = inlined_call_operand.vmem [shape: bf16[64,32], index: 2, kind: input, shape index: {}]   ;;  %s1689_s3 = inlined_call_operand.vmem [shape: f32[64,32], index: 3, kind: input, shape index: {}]   ;;  %s1690_s4 = inlined_call_operand.vmem [shape: f32[64,1], index: 4, kind: input, shape index: {}]   ;;  %s1691_s5 = inlined_call_operand.vmem [shape: f32[64,1], index: 5, kind: input, shape index: {}]   ;;  %s1692_s6 = inlined_call_operand.vmem [shape: bf16[32,128], index: 6, kind: input, shape index: {}]   ;;  %s1693_s7 = inlined_call_operand.vmem [shape: f32[1,128], index: 7, kind: input, shape index: {}]   ;;  %s1694_s8 = inlined_call_operand.hbm [shape: f32[2,64,128], index: 8, kind: output, shape index: {}]  }
   0x1   :  { %v1150_v0 = vld [vmem:[%s1687_s1] sm:$0xff]   ;;  %240 = vmatprep.subr.bf16.mxu0 %v1232_v1  ;;  %1148 = vset.pattern.permute.xlu1 %v1232_v1  ;;  %v1151_v2 = vld [vmem:[%s1687_s1 + $0x8] sm:$0xff]   ;;  %v1152_v3 = vld [vmem:[%s1687_s1 + $0x10] sm:$0xff]  }
   0x2   :  { %241 = vmatpush1.bf16.msra.mxu0 %v1150_v0  ;;  %1149 = vset.pattern.permute.xlu0 %v1232_v1  ;;  %v1153_v4 = vld [vmem:[%s1687_s1 + $0x18] sm:$0xff]   ;;  %v1164_v5 = vld [vmem:[%s1686_s0 + $0x4] ss:$8 sps:$4 sm:$0xff]   ;;  %v1156_v8 = vld [vmem:[%s1687_s1 + $0x30] sm:$0xff]  }
   0x3   :  { %242 = vmatprep.subr.bf16.mxu0 %v1232_v1  ;;  %v1154_v6 = vld [vmem:[%s1687_s1 + $0x20] sm:$0xff]   ;;  %1047 = vmatprep.mubr.msk.bf16.mxu0 %vm215_vm0, %v1164_v5  ;;  %v1155_v7 = vld [vmem:[%s1687_s1 + $0x28] sm:$0xff]   ;;  %v1157_v10 = vld [vmem:[%s1687_s1 + $0x38] sm:$0xff]  }
   0x4   :  { %v1186_v9 = vld [vmem:[%s1688_s2] sm:$0xff]  }
   0x5   :  { %1100 = vmatprep.subr.bf16.mxu1 %v1186_v9 }
   0x6   :  { %243 = vmatpush1.bf16.msra.mxu0 %v1151_v2  ;;  %1101 = vmatpush3.bf16.msra.mxu1 %v1186_v9 }
   0x7   :  { %244 = vmatprep.subr.bf16.mxu0 %v1232_v1 }
   0xa   :  { %245 = vmatpush1.bf16.msra.mxu0 %v1152_v3 }
   0xb   :  { %246 = vmatprep.subr.bf16.mxu0 %v1232_v1 }
   0xe   :  { %247 = vmatpush1.bf16.msra.mxu0 %v1153_v4 }
   0xf   :  { %248 = vmatprep.subr.bf16.mxu0 %v1232_v1 }
  0x12   :  { %249 = vmatpush1.bf16.msra.mxu0 %v1154_v6 }
  0x13   :  { %250 = vmatprep.subr.bf16.mxu0 %v1232_v1 }
  0x16   :  { %251 = vmatpush1.bf16.msra.mxu0 %v1155_v7 }
  0x17   :  { %252 = vmatprep.subr.bf16.mxu0 %v1232_v1 }
  0x1a   :  { %253 = vmatpush1.bf16.msra.mxu0 %v1156_v8 }
  0x1b   :  { %254 = vmatprep.subr.bf16.mxu0 %v1232_v1 }
  0x1c   :  { %13 = vsyncpa [#allocation3], 0  ;;  %v1158_v11 = vld [vmem:[%s1687_s1 + $0x40] sm:$0xff]   ;;  %v1159_v12 = vld [vmem:[%s1687_s1 + $0x48] sm:$0xff]   ;;  %vm522_vm1 = vcmask 261120  }
  0x1d   :  { %v1160_v13 = vld [vmem:[%s1687_s1 + $0x50] sm:$0xff]   ;;  %v1161_v14 = vld [vmem:[%s1687_s1 + $0x58] sm:$0xff]   ;;  %v1162_v15 = vld [vmem:[%s1686_s0] ss:$8 sps:$4 sm:$0xff]  }
  0x1e   :  { %255 = vmatpush1.bf16.msra.mxu0 %v1157_v10  ;;  %v1165_v16 = vld [vmem:[%s1686_s0 + $0x14] ss:$8 sps:$4 sm:$0xff]   ;;  %v1167_v17 = vld [vmem:[%s1686_s0 + $0x10] ss:$8 sps:$4 sm:$0xff]   ;;  %v1168_v18 = vld [vmem:[%s1686_s0 + $0x24] ss:$8 sps:$4 sm:$0xff]  }
  0x1f   :  { %256 = vmatprep.subr.bf16.mxu0 %v1232_v1  ;;  %v1170_v19 = vld [vmem:[%s1686_s0 + $0x20] ss:$8 sps:$4 sm:$0xff]   ;;  %v1171_v20 = vld [vmem:[%s1686_s0 + $0x34] ss:$8 sps:$4 sm:$0xff]   ;;  %v1173_v21 = vld [vmem:[%s1686_s0 + $0x30] ss:$8 sps:$4 sm:$0xff]  }
  0x20   :  { %v1174_v22 = vld [vmem:[%s1686_s0 + $0x44] ss:$8 sps:$4 sm:$0xff]   ;;  %v1176_v23 = vld [vmem:[%s1686_s0 + $0x40] ss:$8 sps:$4 sm:$0xff]   ;;  %v1177_v24 = vld [vmem:[%s1686_s0 + $0x54] ss:$8 sps:$4 sm:$0xff]  }
  0x21   :  { %v1179_v25 = vld [vmem:[%s1686_s0 + $0x50] ss:$8 sps:$4 sm:$0xff]   ;;  %v1180_v26 = vld [vmem:[%s1686_s0 + $0x64] ss:$8 sps:$4 sm:$0xff]   ;;  %v1182_v27 = vld [vmem:[%s1686_s0 + $0x60] ss:$8 sps:$4 sm:$0xff]  }
  0x22   :  { %257 = vmatpush1.bf16.msra.mxu0 %v1158_v11  ;;  %v1183_v28 = vld [vmem:[%s1686_s0 + $0x74] ss:$8 sps:$4 sm:$0xff]   ;;  %v1185_v29 = vld [vmem:[%s1686_s0 + $0x70] ss:$8 sps:$4 sm:$0xff]   ;;  %v1187_v30 = vld [vmem:[%s1688_s2 + $0x8] sm:$0xff]  }
  0x23   :  { %258 = vmatprep.subr.bf16.mxu0 %v1232_v1  ;;  %1102 = vmatprep.subr.bf16.mxu1 %v1187_v30  ;;  %v1188_v31 = vld [vmem:[%s1688_s2 + $0x10] sm:$0xff]   ;;  %v1189_v32 = vld [vmem:[%s1688_s2 + $0x18] sm:$0xff]  }
  0x24   :  { %1103 = vmatpush3.bf16.msra.mxu1 %v1187_v30 }
  0x25   :  { %1104 = vmatprep.subr.bf16.mxu1 %v1188_v31 }
  0x26   :  { %259 = vmatpush1.bf16.msra.mxu0 %v1159_v12 }
  0x27   :  { %260 = vmatprep.subr.bf16.mxu0 %v1232_v1 }
  0x28   :  { %1105 = vmatpush3.bf16.msra.mxu1 %v1188_v31 }
  0x29   :  { %1106 = vmatprep.subr.bf16.mxu1 %v1189_v32 }
  0x2a   :  { %261 = vmatpush1.bf16.msra.mxu0 %v1160_v13 }
  0x2b   :  { %262 = vmatprep.subr.bf16.mxu0 %v1232_v1 }
  0x2c   :  { %1107 = vmatpush3.bf16.msra.mxu1 %v1189_v32 }
  0x2e   :  { %263 = vmatpush1.bf16.msra.mxu0 %v1161_v14 }
  0x31   :  { %273 = vmatmul.mubr.bf16.vlgmr.msra.gmra.mrb[0].mxu0 %v1162_v15 }
  0x32   :  { %1048 = vmatprep.mubr.msk.bf16.mxu0 %vm215_vm0, %v1165_v16 }
  0x39   :  { %281 = vmatmul.mubr.bf16.gmra.mrb[4].mxu0 %v1167_v17  ;;  %v500_v17 = vld [vmem:[%s1689_s3 + $0x10] sm:$0xff] }
  0x3a   :  { %1049 = vmatprep.mubr.msk.bf16.mxu0 %vm215_vm0, %v1168_v18  ;;  %v498_v18 = vld [vmem:[%s1689_s3] sm:$0xff] }
  0x41   :  { %289 = vmatmul.mubr.bf16.gmra.mrb[8].mxu0 %v1170_v19  ;;  %v501_v19 = vld [vmem:[%s1689_s3 + $0x18] sm:$0xff] }
  0x42   :  { %1050 = vmatprep.mubr.msk.bf16.mxu0 %vm215_vm0, %v1171_v20 }
  0x49   :  { %297 = vmatmul.mubr.bf16.gmra.mrb[12].mxu0 %v1173_v21  ;;  %v499_v21 = vld [vmem:[%s1689_s3 + $0x8] sm:$0xff] }
  0x4a   :  { %1051 = vmatprep.mubr.msk.bf16.mxu0 %vm215_vm0, %v1174_v22 }
  0x51   :  { %305 = vmatmul.mubr.bf16.gmra.mrb[16].mxu0 %v1176_v23 }
  0x52   :  { %1052 = vmatprep.mubr.msk.bf16.mxu0 %vm215_vm0, %v1177_v24 }
  0x59   :  { %313 = vmatmul.mubr.bf16.gmra.mrb[20].mxu0 %v1179_v25 }
  0x5a   :  { %1053 = vmatprep.mubr.msk.bf16.mxu0 %vm215_vm0, %v1180_v26 }
  0x61   :  { %321 = vmatmul.mubr.bf16.gmra.mrb[24].mxu0 %v1182_v27 }
  0x62   :  { %1054 = vmatprep.mubr.msk.bf16.mxu0 %vm215_vm0, %v1183_v28 }
  0x69   :  { %329 = vmatmul.mubr.bf16.gmra.mrb[28].mxu0 %v1185_v29 }
 0x104   :  { %v274_v33 = vpop.f32.mrb[0].mxu0 }
 0x105   :  { %v276_v34 = vpop.f32.mrb[1].mxu0 }
 0x106   :  { %v277_v35 = vpop.f32.mrb[2].mxu0 }
 0x107   :  { %v337_v36 = vpack.c.bf16 %v277_v35, %v274_v33  ;;  %v279_v37 = vpop.f32.mrb[3].mxu0 }
 0x109   :  { %1108 = vmatprep.mubr.msk.bf16.mxu1 %vm215_vm0, %v337_v36 }
 0x10c   :  { %v282_v38 = vpop.f32.mrb[4].mxu0 }
 0x10d   :  { %v284_v39 = vpop.f32.mrb[5].mxu0 }
 0x10e   :  { %v285_v40 = vpop.f32.mrb[6].mxu0 }
 0x10f   :  { %v338_v41 = vpack.c.bf16 %v285_v40, %v282_v38  ;;  %v287_v42 = vpop.f32.mrb[7].mxu0 }
 0x111   :  { %1109 = vmatmul.mubr.msk.bf16.vlgmr.msra.gmra.mrb[0].mxu1 %vm215_vm0, %v338_v41 }
 0x114   :  { %v290_v43 = vpop.f32.mrb[8].mxu0 }
 0x115   :  { %v292_v44 = vpop.f32.mrb[9].mxu0 }
 0x116   :  { %v293_v45 = vpop.f32.mrb[10].mxu0 }
 0x117   :  { %v339_v46 = vpack.c.bf16 %v293_v45, %v290_v43  ;;  %v295_v47 = vpop.f32.mrb[11].mxu0 }
 0x119   :  { %1112 = vmatprep.mubr.msk.bf16.mxu1 %vm215_vm0, %v339_v46 }
 0x11c   :  { %v298_v48 = vpop.f32.mrb[12].mxu0 }
 0x11d   :  { %v300_v49 = vpop.f32.mrb[13].mxu0 }
 0x11e   :  { %v301_v50 = vpop.f32.mrb[14].mxu0  ;;  %v502_v49 = vld [vmem:[%s1689_s3 + $0x20] sm:$0xff] }
 0x11f   :  { %v340_v51 = vpack.c.bf16 %v301_v50, %v298_v48  ;;  %v303_v52 = vpop.f32.mrb[15].mxu0  ;;  %v504_v50 = vld [vmem:[%s1689_s3 + $0x30] sm:$0xff] }
 0x121   :  { %1113 = vmatmul.mubr.msk.bf16.gmra.mrb[4].mxu1 %vm215_vm0, %v340_v51  ;;  %v503_v51 = vld [vmem:[%s1689_s3 + $0x28] sm:$0xff] }
 0x124   :  { %v306_v53 = vpop.f32.mrb[16].mxu0 }
 0x125   :  { %v308_v54 = vpop.f32.mrb[17].mxu0 }
 0x126   :  { %v309_v55 = vpop.f32.mrb[18].mxu0 }
 0x127   :  { %v341_v56 = vpack.c.bf16 %v309_v55, %v306_v53  ;;  %v311_v57 = vpop.f32.mrb[19].mxu0  ;;  %v505_v53 = vld [vmem:[%s1689_s3 + $0x38] sm:$0xff] }
 0x129   :  { %1116 = vmatprep.mubr.msk.bf16.mxu1 %vm215_vm0, %v341_v56 }
 0x12c   :  { %v314_v58 = vpop.f32.mrb[20].mxu0 }
 0x12d   :  { %v316_v59 = vpop.f32.mrb[21].mxu0 }
 0x12e   :  { %v317_v60 = vpop.f32.mrb[22].mxu0 }
 0x12f   :  { %v342_v61 = vpack.c.bf16 %v317_v60, %v314_v58  ;;  %v319_v62 = vpop.f32.mrb[23].mxu0 }
 0x131   :  { %1117 = vmatmul.mubr.msk.bf16.gmra.mrb[8].mxu1 %vm215_vm0, %v342_v61 }
 0x134   :  { %v322_v63 = vpop.f32.mrb[24].mxu0 }
 0x135   :  { %v324_v0 = vpop.f32.mrb[25].mxu0 }
 0x136   :  { %v325_v1 = vpop.f32.mrb[26].mxu0 }
 0x137   :  { %v343_v2 = vpack.c.bf16 %v325_v1, %v322_v63  ;;  %v327_v3 = vpop.f32.mrb[27].mxu0 }
 0x139   :  { %1120 = vmatprep.mubr.msk.bf16.mxu1 %vm215_vm0, %v343_v2 }
 0x13c   :  { %v330_v4 = vpop.f32.mrb[28].mxu0 }
 0x13d   :  { %v332_v5 = vpop.f32.mrb[29].mxu0 }
 0x13e   :  { %v333_v6 = vpop.f32.mrb[30].mxu0 }
 0x13f   :  { %v344_v7 = vpack.c.bf16 %v333_v6, %v330_v4  ;;  %v335_v8 = vpop.f32.mrb[31].mxu0 }
 0x141   :  { %1121 = vmatmul.mubr.msk.bf16.gmra.mrb[12].mxu1 %vm215_vm0, %v344_v7 }
 0x1e4   :  { %v1110_v9 = vpop.f32.mrb[0].mxu1 }
 0x1e5   :  { %v435_v10 = vpop.f32.mrb[1].mxu1  ;;  %v1402_v20 = vadd.f32 %v1110_v9, %v500_v17 }
 0x1e6   :  { %v1111_v11 = vpop.f32.mrb[2].mxu1  ;;  %v1407_v22 = vadd.f32 %v498_v18, %v435_v10 }
 0x1e7   :  { %v438_v12 = vpop.f32.mrb[3].mxu1  ;;  %v1409_v24 = vadd.f32 %v1111_v11, %v501_v19  ;;  %v529_v30 = vsel %vm522_vm1, %v1402_v20, 0.0 }
 0x1e8   :  { %v1413_v27 = vadd.f32 %v499_v21, %v438_v12  ;;  %v523_v34 = vsel %vm522_vm1, %v1407_v22, 0.0 }
 0x1e9   :  { %v532_v38 = vsel %vm522_vm1, %v1409_v24, 0.0 }
 0x1ea   :  { %v526_v41 = vsel %vm522_vm1, %v1413_v27, 0.0 }
 0x1f4   :  { %v1114_v13 = vpop.f32.mrb[4].mxu1 }
 0x1f5   :  { %v451_v14 = vpop.f32.mrb[5].mxu1  ;;  %v1457_v57 = vadd.f32 %v1114_v13, %v504_v50 }
 0x1f6   :  { %v1115_v15 = vpop.f32.mrb[6].mxu1  ;;  %v1450_v52 = vadd.f32 %v502_v49, %v451_v14 }
 0x1f7   :  { %v454_v16 = vpop.f32.mrb[7].mxu1  ;;  %v1463_v61 = vadd.f32 %v1115_v15, %v505_v53  ;;  %v541_v5 = vsel %vm522_vm1, %v1457_v57, 0.0 }
 0x1f8   :  { %v1459_v58 = vadd.f32 %v503_v51, %v454_v16  ;;  %v535_v0 = vsel %vm522_vm1, %v1450_v52, 0.0 }
 0x1f9   :  { %v544_v12 = vsel %vm522_vm1, %v1463_v61, 0.0 }
 0x1fa   :  { %v538_v6 = vsel %vm522_vm1, %v1459_v58, 0.0 }
 0x204   :  { %v1118_v23 = vpop.f32.mrb[8].mxu1 }
 0x205   :  { %v1411_v25 = vadd.f32 %v1118_v23, %v500_v17  ;;  %v467_v26 = vpop.f32.mrb[9].mxu1 }
 0x206   :  { %v1415_v28 = vadd.f32 %v498_v18, %v467_v26  ;;  %v1119_v29 = vpop.f32.mrb[10].mxu1 }
 0x207   :  { %v530_v31 = vsel %vm522_vm1, %v1411_v25, 0.0  ;;  %v1421_v32 = vadd.f32 %v1119_v29, %v501_v19  ;;  %v470_v33 = vpop.f32.mrb[11].mxu1 }
 0x208   :  { %v524_v35 = vsel %vm522_vm1, %v1415_v28, 0.0  ;;  %v1427_v36 = vadd.f32 %v499_v21, %v470_v33  ;;  %v531_v37 = vadd.f32 %v530_v31, %v529_v30 }
 0x209   :  { %v533_v39 = vsel %vm522_vm1, %v1421_v32, 0.0  ;;  %v525_v40 = vadd.f32 %v524_v35, %v523_v34 }
 0x20a   :  { %v527_v42 = vsel %vm522_vm1, %v1427_v36, 0.0  ;;  %v553_v43 = vsel %vm522_vm1, %v531_v37, 0.0  ;;  %v534_v44 = vadd.f32 %v533_v39, %v532_v38 }
 0x20b   :  { %554 = vadd.xlane.f32.xlu1 %v553_v43  ;;  %v547_v45 = vsel %vm522_vm1, %v525_v40, 0.0  ;;  %v528_v46 = vadd.f32 %v527_v42, %v526_v41 }
 0x20c   :  { %548 = vadd.xlane.f32.xlu0 %v547_v45  ;;  %v556_v47 = vsel %vm522_vm1, %v534_v44, 0.0 }
 0x20d   :  { %v550_v48 = vsel %vm522_vm1, %v528_v46, 0.0 }
 0x20f   :  { %557 = vadd.xlane.f32.xlu1 %v556_v47 }
 0x210   :  { %551 = vadd.xlane.f32.xlu0 %v550_v48 }
 0x214   :  { %v1122_v54 = vpop.f32.mrb[12].mxu1 }
 0x215   :  { %v1455_v55 = vadd.f32 %v1122_v54, %v504_v50  ;;  %v483_v56 = vpop.f32.mrb[13].mxu1 }
 0x216   :  { %v1461_v59 = vadd.f32 %v502_v49, %v483_v56  ;;  %v1123_v60 = vpop.f32.mrb[14].mxu1 }
 0x217   :  { %v1465_v62 = vadd.f32 %v1123_v60, %v505_v53  ;;  %v486_v63 = vpop.f32.mrb[15].mxu1  ;;  %v542_v1 = vsel %vm522_vm1, %v1455_v55, 0.0 }
 0x218   :  { %v536_v2 = vsel %vm522_vm1, %v1461_v59, 0.0  ;;  %v1473_v3 = vadd.f32 %v503_v51, %v486_v63  ;;  %v543_v11 = vadd.f32 %v542_v1, %v541_v5 }
 0x219   :  { %v537_v4 = vadd.f32 %v536_v2, %v535_v0  ;;  %v545_v7 = vsel %vm522_vm1, %v1465_v62, 0.0 }
 0x21a   :  { %v539_v8 = vsel %vm522_vm1, %v1473_v3, 0.0  ;;  %v546_v14 = vadd.f32 %v545_v7, %v544_v12  ;;  %v565_v15 = vsel %vm522_vm1, %v543_v11, 0.0 }
 0x21b   :  { %v559_v9 = vsel %vm522_vm1, %v537_v4, 0.0  ;;  %v540_v10 = vadd.f32 %v539_v8, %v538_v6 }
 0x21c   :  { %560 = vadd.xlane.f32.xlu0 %v559_v9  ;;  %v568_v16 = vsel %vm522_vm1, %v546_v14, 0.0 }
 0x21d   :  { %v562_v13 = vsel %vm522_vm1, %v540_v10, 0.0 }
 0x21e   :  { %563 = vadd.xlane.f32.xlu1 %v562_v13 }
 0x220   :  { %566 = vadd.xlane.f32.xlu0 %v565_v15 }
 0x222   :  { %569 = vadd.xlane.f32.xlu1 %v568_v16 }
 0x298   :  { %v555_v17 = vpop.xlane.xlu1 %554 }
 0x299   :  { %v573_v18 = vmul.f32 0.015625, %v555_v17  ;;  %v549_v19 = vpop.xlane.xlu0 %548 }
 0x29a   :  { %v571_v21 = vmul.f32 0.015625, %v549_v19 }
 0x29b   :  { %v1490_v23 = vsub.f32 %v1402_v20, %v573_v18  ;;  %v1493_v26 = vsub.f32 %v1411_v25, %v573_v18 }
 0x29c   :  { %v1496_v29 = vsub.f32 %v1407_v22, %v571_v21  ;;  %v1499_v30 = vsub.f32 %v1415_v28, %v571_v21  ;;  %v558_v31 = vpop.xlane.xlu1 %557 }
 0x29d   :  { %v597_v33 = vmul.f32 %v1490_v23, %v1490_v23  ;;  %v605_v34 = vmul.f32 %v1493_v26, %v1493_v26  ;;  %v574_v35 = vmul.f32 0.015625, %v558_v31  ;;  %v552_v37 = vpop.xlane.xlu0 %551 }
 0x29e   :  { %v595_v20 = vmul.f32 %v1496_v29, %v1496_v29  ;;  %v603_v25 = vmul.f32 %v1499_v30, %v1499_v30  ;;  %v572_v22 = vmul.f32 0.015625, %v552_v37 }
 0x29f   :  { %v1510_v38 = vsub.f32 %v1409_v24, %v574_v35  ;;  %v1513_v28 = vsub.f32 %v1421_v32, %v574_v35  ;;  %v617_v39 = vsel %vm522_vm1, %v597_v33, 0.0  ;;  %v618_v40 = vsel %vm522_vm1, %v605_v34, 0.0 }
 0x2a0   :  { %v1518_v41 = vsub.f32 %v1413_v27, %v572_v22  ;;  %v1521_v42 = vsub.f32 %v1427_v36, %v572_v22  ;;  %v611_v43 = vsel %vm522_vm1, %v595_v20, 0.0  ;;  %v612_v44 = vsel %vm522_vm1, %v603_v25, 0.0 }
 0x2a1   :  { %v598_v24 = vmul.f32 %v1510_v38, %v1510_v38  ;;  %v606_v32 = vmul.f32 %v1513_v28, %v1513_v28  ;;  %v613_v45 = vadd.f32 %v612_v44, %v611_v43  ;;  %v619_v47 = vadd.f32 %v618_v40, %v617_v39 }
 0x2a2   :  { %v596_v46 = vmul.f32 %v1518_v41, %v1518_v41  ;;  %v604_v27 = vmul.f32 %v1521_v42, %v1521_v42 }
 0x2a3   :  { %v635_v36 = vsel %vm522_vm1, %v613_v45, 0.0  ;;  %v620_v50 = vsel %vm522_vm1, %v598_v24, 0.0  ;;  %v621_v51 = vsel %vm522_vm1, %v606_v32, 0.0  ;;  %v641_v54 = vsel %vm522_vm1, %v619_v47, 0.0  ;;  %v755_v24 = vld [vmem:[%s1691_s5] sm:$0xff]  ;;  %v760_v32 = vld [vmem:[%s1691_s5 + $0x28] sm:$0xff] }
 0x2a4   :  { %636 = vadd.xlane.f32.xlu0 %v635_v36  ;;  %v614_v48 = vsel %vm522_vm1, %v596_v46, 0.0  ;;  %v615_v49 = vsel %vm522_vm1, %v604_v27, 0.0  ;;  %v622_v60 = vadd.f32 %v621_v51, %v620_v50  ;;  %v756_v45 = vld [vmem:[%s1691_s5 + $0x8] sm:$0xff]  ;;  %v757_v46 = vld [vmem:[%s1691_s5 + $0x10] sm:$0xff]  ;;  %v758_v27 = vld [vmem:[%s1691_s5 + $0x18] sm:$0xff] }
 0x2a5   :  { %v616_v53 = vadd.f32 %v615_v49, %v614_v48  ;;  %v759_v36 = vld [vmem:[%s1691_s5 + $0x20] sm:$0xff] }
 0x2a6   :  { %v644_v2 = vsel %vm522_vm1, %v622_v60, 0.0  ;;  %v1190_v47 = vld [vmem:[%s1692_s6] sm:$0xff]  }
 0x2a7   :  { %v638_v56 = vsel %vm522_vm1, %v616_v53, 0.0  ;;  %1124 = vmatprep.subr.bf16.mxu1 %v1190_v47 }
 0x2a8   :  { %642 = vadd.xlane.f32.xlu0 %v641_v54  ;;  %639 = vadd.xlane.f32.xlu1 %v638_v56 }
 0x2a9   :  { %v561_v63 = vpop.xlane.xlu0 %560  ;;  %1125 = vmatpush3.bf16.msra.mxu1 %v1190_v47 }
 0x2aa   :  { %v575_v0 = vmul.f32 0.015625, %v561_v63 }
 0x2ab   :  { %v564_v1 = vpop.xlane.xlu1 %563 }
 0x2ac   :  { %v1542_v4 = vsub.f32 %v1450_v52, %v575_v0  ;;  %v1545_v5 = vsub.f32 %v1461_v59, %v575_v0  ;;  %v576_v6 = vmul.f32 0.015625, %v564_v1  ;;  %645 = vadd.xlane.f32.xlu1 %v644_v2 }
 0x2ad   :  { %v567_v7 = vpop.xlane.xlu0 %566 }
 0x2ae   :  { %v599_v8 = vmul.f32 %v1542_v4, %v1542_v4  ;;  %v607_v9 = vmul.f32 %v1545_v5, %v1545_v5  ;;  %v1552_v10 = vsub.f32 %v1459_v58, %v576_v6  ;;  %v1555_v11 = vsub.f32 %v1473_v3, %v576_v6  ;;  %v667_v6 = vld [vmem:[%s1690_s4] sm:$0xff] }
 0x2af   :  { %v577_v52 = vmul.f32 0.015625, %v567_v7  ;;  %v570_v12 = vpop.xlane.xlu1 %569 }
 0x2b0   :  { %v600_v59 = vmul.f32 %v1552_v10, %v1552_v10  ;;  %v608_v13 = vmul.f32 %v1555_v11, %v1555_v11  ;;  %v578_v14 = vmul.f32 0.015625, %v570_v12  ;;  %v623_v15 = vsel %vm522_vm1, %v599_v8, 0.0 }
 0x2b1   :  { %v1563_v16 = vsub.f32 %v1457_v57, %v577_v52  ;;  %v1566_v58 = vsub.f32 %v1455_v55, %v577_v52  ;;  %v624_v3 = vsel %vm522_vm1, %v607_v9, 0.0  ;;  %v669_v52 = vld [vmem:[%s1690_s4 + $0x10] sm:$0xff] }
 0x2b2   :  { %v1570_v17 = vsub.f32 %v1463_v61, %v578_v14  ;;  %v1573_v18 = vsub.f32 %v1465_v62, %v578_v14  ;;  %v625_v19 = vadd.f32 %v624_v3, %v623_v15  ;;  %v626_v21 = vsel %vm522_vm1, %v600_v59, 0.0  ;;  %v670_v3 = vld [vmem:[%s1690_s4 + $0x18] sm:$0xff] }
 0x2b3   :  { %v601_v31 = vmul.f32 %v1563_v16, %v1563_v16  ;;  %v609_v57 = vmul.f32 %v1566_v58, %v1566_v58  ;;  %v627_v55 = vsel %vm522_vm1, %v608_v13, 0.0 }
 0x2b4   :  { %v602_v33 = vmul.f32 %v1570_v17, %v1570_v17  ;;  %v610_v61 = vmul.f32 %v1573_v18, %v1573_v18  ;;  %v647_v62 = vsel %vm522_vm1, %v625_v19, 0.0  ;;  %v628_v34 = vadd.f32 %v627_v55, %v626_v21 }
 0x2b5   :  { %648 = vadd.xlane.f32.xlu0 %v647_v62  ;;  %v629_v35 = vsel %vm522_vm1, %v601_v31, 0.0  ;;  %v630_v37 = vsel %vm522_vm1, %v609_v57, 0.0 }
 0x2b6   :  { %v650_v20 = vsel %vm522_vm1, %v628_v34, 0.0  ;;  %v631_v25 = vadd.f32 %v630_v37, %v629_v35  ;;  %v632_v22 = vsel %vm522_vm1, %v602_v33, 0.0  ;;  %v633_v39 = vsel %vm522_vm1, %v610_v61, 0.0  ;;  %v668_v35 = vld [vmem:[%s1690_s4 + $0x8] sm:$0xff] }
 0x2b7   :  { %651 = vadd.xlane.f32.xlu1 %v650_v20  ;;  %v634_v40 = vadd.f32 %v633_v39, %v632_v22  ;;  %v1191_v22 = vld [vmem:[%s1692_s6 + $0x8] sm:$0xff]   ;;  %v673_v39 = vld [vmem:[%s1690_s4 + $0x30] sm:$0xff] }
 0x2b8   :  { %v653_v43 = vsel %vm522_vm1, %v631_v25, 0.0  ;;  %1126 = vmatprep.subr.bf16.mxu1 %v1191_v22 }
 0x2b9   :  { %654 = vadd.xlane.f32.xlu0 %v653_v43  ;;  %v656_v44 = vsel %vm522_vm1, %v634_v40, 0.0  ;;  %1127 = vmatpush3.bf16.msra.mxu1 %v1191_v22  ;;  %v674_v43 = vld [vmem:[%s1690_s4 + $0x38] sm:$0xff] }
 0x2bb   :  { %657 = vadd.xlane.f32.xlu1 %v656_v44 }
 0x2cc   :  { %765 = vperm.xlu1 %1148, %v755_v24  }
 0x2cf   :  { %790 = vperm.xlu0 %1149, %v760_v32  }
 0x2d0   :  { %770 = vperm.xlu1 %1148, %v756_v45   ;;  %v671_v45 = vld [vmem:[%s1690_s4 + $0x20] sm:$0xff] }
 0x2d4   :  { %775 = vperm.xlu1 %1148, %v757_v46  }
 0x2d8   :  { %780 = vperm.xlu1 %1148, %v758_v27  }
 0x2dc   :  { %785 = vperm.xlu1 %1148, %v759_v36   ;;  %v672_v36 = vld [vmem:[%s1690_s4 + $0x28] sm:$0xff] }
 0x331   :  { %v637_v48 = vpop.xlane.xlu0 %636 }
 0x332   :  { %v659_v49 = vmul.f32 0.015625, %v637_v48 }
 0x334   :  { %v675_v50 = vadd.f32 1e-05, %v659_v49  ;;  %v761_v49 = vld [vmem:[%s1691_s5 + $0x30] sm:$0xff] }
 0x335   :  { %v643_v51 = vpop.xlane.xlu0 %642  ;;  %v640_v53 = vpop.xlane.xlu1 %639 }
 0x336   :  { %1192 = vrsqrt.f32 %v675_v50  ;;  %v661_v54 = vmul.f32 0.015625, %v643_v51  ;;  %v660_v60 = vmul.f32 0.015625, %v640_v53  ;;  %v762_v50 = vld [vmem:[%s1691_s5 + $0x38] sm:$0xff] }
 0x338   :  { %v677_v56 = vadd.f32 1e-05, %v661_v54  ;;  %v676_v1 = vadd.f32 1e-05, %v660_v60 }
 0x339   :  { %v646_v63 = vpop.xlane.xlu1 %645 }
 0x33a   :  { %1194 = vrsqrt.f32 %v677_v56  ;;  %v662_v0 = vmul.f32 0.015625, %v646_v63 }
 0x33c   :  { %v678_v2 = vadd.f32 1e-05, %v662_v0 }
 0x33e   :  { %1196 = vrsqrt.f32 %v678_v2 }
 0x33f   :  { %1198 = vrsqrt.f32 %v676_v1 }
 0x340   :  { %v1193_v7 = vpop.eup %1192 }
 0x341   :  { %v691_v8 = vmul.f32 %v1193_v7, %v667_v6 }
 0x342   :  { %v649_v9 = vpop.xlane.xlu0 %648 }
 0x343   :  { %701 = vperm.xlu0 %1149, %v691_v8   ;;  %v663_v59 = vmul.f32 0.015625, %v649_v9 }
 0x344   :  { %v1195_v12 = vpop.eup %1194  ;;  %v652_v13 = vpop.xlane.xlu1 %651 }
 0x345   :  { %v693_v14 = vmul.f32 %v1195_v12, %v669_v52  ;;  %v664_v19 = vmul.f32 0.015625, %v652_v13  ;;  %v679_v57 = vadd.f32 1e-05, %v663_v59 }
 0x346   :  { %v655_v15 = vpop.xlane.xlu0 %654 }
 0x347   :  { %v665_v21 = vmul.f32 0.015625, %v655_v15  ;;  %711 = vperm.xlu1 %1148, %v693_v14   ;;  %v680_v37 = vadd.f32 1e-05, %v664_v19 }
 0x348   :  { %v1197_v31 = vpop.eup %1196  ;;  %v658_v55 = vpop.xlane.xlu1 %657 }
 0x349   :  { %v681_v33 = vadd.f32 1e-05, %v665_v21  ;;  %v666_v61 = vmul.f32 0.015625, %v658_v55  ;;  %v694_v62 = vmul.f32 %v1197_v31, %v670_v3  ;;  %v1199_v34 = vpop.eup %1198 }
 0x34a   :  { %v692_v25 = vmul.f32 %v1199_v34, %v668_v35 }
 0x34b   :  { %1200 = vrsqrt.f32 %v681_v33  ;;  %v682_v20 = vadd.f32 1e-05, %v666_v61  ;;  %716 = vperm.xlu1 %1148, %v694_v62  }
 0x34c   :  { %1202 = vrsqrt.f32 %v679_v57  ;;  %v766_v51 = vpop.permute.xlu1 %765 }
 0x34d   :  { %1204 = vrsqrt.f32 %v682_v20 }
 0x34e   :  { %1206 = vrsqrt.f32 %v680_v37  ;;  %v791_v63 = vpop.permute.xlu0 %790 }
 0x34f   :  { %706 = vperm.xlu1 %1148, %v692_v25  }
 0x350   :  { %v771_v53 = vpop.permute.xlu1 %770 }
 0x354   :  { %v776_v54 = vpop.permute.xlu1 %775 }
 0x355   :  { %v1201_v40 = vpop.eup %1200 }
 0x356   :  { %v1203_v44 = vpop.eup %1202  ;;  %v697_v24 = vmul.f32 %v1201_v40, %v673_v39 }
 0x357   :  { %v1205_v32 = vpop.eup %1204  ;;  %v695_v47 = vmul.f32 %v1203_v44, %v671_v45 }
 0x358   :  { %731 = vperm.xlu1 %1148, %v697_v24   ;;  %v698_v46 = vmul.f32 %v1205_v32, %v674_v43  ;;  %v1207_v27 = vpop.eup %1206  ;;  %v781_v56 = vpop.permute.xlu1 %780 }
 0x359   :  { %v696_v48 = vmul.f32 %v1207_v27, %v672_v36 }
 0x35a   :  { %736 = vperm.xlu0 %1149, %v698_v46  }
 0x35c   :  { %721 = vperm.xlu1 %1148, %v695_v47   ;;  %v786_v60 = vpop.permute.xlu1 %785 }
 0x35e   :  { %726 = vperm.xlu0 %1149, %v696_v48  }
 0x360   :  { %795 = vperm.xlu1 %1148, %v761_v49  }
 0x362   :  { %800 = vperm.xlu0 %1149, %v762_v50  }
 0x3c2   :  { %v702_v1 = vpop.permute.xlu0 %701 }
 0x3c3   :  { %v739_v6 = vmul.f32 %v702_v1, %v1496_v29 }
 0x3c5   :  { %v803_v12 = vadd.f32 %v766_v51, %v739_v6 }
 0x3c6   :  { %v712_v0 = vpop.permute.xlu1 %711 }
 0x3c7   :  { %v741_v8 = vmul.f32 %v712_v0, %v1490_v23  ;;  %v819_v3 = vmax.f32 %v803_v12, 0.0 }
 0x3c9   :  { %v805_v13 = vadd.f32 %v776_v54, %v741_v8 }
 0x3ca   :  { %v717_v2 = vpop.permute.xlu1 %716 }
 0x3cb   :  { %v742_v7 = vmul.f32 %v717_v2, %v1510_v38  ;;  %v821_v21 = vmax.f32 %v805_v13, 0.0 }
 0x3cd   :  { %v806_v9 = vadd.f32 %v781_v56, %v742_v7 }
 0x3ce   :  { %v707_v52 = vpop.permute.xlu1 %706 }
 0x3cf   :  { %v740_v59 = vmul.f32 %v707_v52, %v1518_v41  ;;  %v822_v15 = vmax.f32 %v806_v9, 0.0  ;;  %v748_v23 = vmul.f32 %v707_v52, %v1521_v42  ;;  %v747_v41 = vmul.f32 %v702_v1, %v1499_v30 }
 0x3d0   :  { %v750_v42 = vmul.f32 %v717_v2, %v1513_v28 }
 0x3d1   :  { %v804_v14 = vadd.f32 %v771_v53, %v740_v59  ;;  %v836_v57 = vpack.c.bf16 %v822_v15, %v821_v21  ;;  %v812_v35 = vadd.f32 %v771_v53, %v748_v23  ;;  %v811_v39 = vadd.f32 %v766_v51, %v747_v41 }
 0x3d2   :  { %v814_v36 = vadd.f32 %v781_v56, %v750_v42 }
 0x3d3   :  { %v820_v19 = vmax.f32 %v804_v14, 0.0  ;;  %v828_v30 = vmax.f32 %v812_v35, 0.0  ;;  %v827_v27 = vmax.f32 %v811_v39, 0.0 }
 0x3d5   :  { %v835_v31 = vpack.c.bf16 %v820_v19, %v819_v3  ;;  %v839_v48 = vpack.c.bf16 %v828_v30, %v827_v27 }
 0x3d7   :  { %v732_v55 = vpop.permute.xlu1 %731  ;;  %1128 = vmatprep.mubr.msk.bf16.mxu1 %vm522_vm1, %v835_v31 }
 0x3d8   :  { %1129 = vmatmul.mubr.msk.bf16.vlgmr.msra.gmra.mrb[16].mxu1 %vm522_vm1, %v836_v57  ;;  %v745_v37 = vmul.f32 %v732_v55, %v1563_v16 }
 0x3d9   :  { %v737_v29 = vpop.permute.xlu0 %736 }
 0x3da   :  { %v746_v25 = vmul.f32 %v737_v29, %v1570_v17  ;;  %v754_v53 = vmul.f32 %v737_v29, %v1573_v18  ;;  %v1067_v18 = vld [vmem:[%s1693_s7] ss:$0 sm:$0xff]  ;;  %s1233_s7 = smov [#allocation2]  }
 0x3db   :  { %v722_v38 = vpop.permute.xlu1 %721  ;;  %s1008_s22 = sshll.u32 %s1233_s7, 4  ;;  %s1009_s22 = int_to_ptr.vmem [resolvable:$true] %s1008_s22 }
 0x3dc   :  { %v743_v33 = vmul.f32 %v722_v38, %v1542_v4  ;;  %v751_v17 = vmul.f32 %v722_v38, %v1545_v5  ;;  %v753_v5 = vmul.f32 %v732_v55, %v1566_v58  ;;  %s1208_s0 = scalar_lea.vmem %s1009_s22, 2048  ;;  %p1213_p1 = scmp.lt.s32.totalorder %s1009_s22, %s1009_s22 }
 0x3dd   :  { %v727_v61 = vpop.permute.xlu0 %726  ;;  %p1209_p0 = scmp.ne.s32.totalorder %s1009_s22, %s1208_s0  ;;  %p1214_p2 = scmp.lt.s32.totalorder %s1208_s0, %s1208_s0 }
 0x3de   :  { %v807_v62 = vadd.f32 %v786_v60, %v743_v33  ;;  %v744_v34 = vmul.f32 %v727_v61, %v1552_v10  ;;  %v752_v32 = vmul.f32 %v727_v61, %v1555_v11  ;;  %v749_v10 = vmul.f32 %v712_v0, %v1493_v26 }
 0x3df   :  { %v796_v20 = vpop.permute.xlu1 %795  ;;  %v815_v50 = vadd.f32 %v786_v60, %v751_v17  ;;  %v830_v11 = vmax.f32 %v814_v36, 0.0  ;;  %p1215_p3 = por %p1214_p2, %p1213_p1 }
 0x3e0   :  { %v808_v22 = vadd.f32 %v791_v63, %v744_v34  ;;  %v809_v40 = vadd.f32 %v796_v20, %v745_v37  ;;  %v823_v44 = vmax.f32 %v807_v62, 0.0  ;;  %v816_v28 = vadd.f32 %v791_v63, %v752_v32 }
 0x3e1   :  { %v801_v43 = vpop.permute.xlu0 %800  ;;  %v813_v49 = vadd.f32 %v776_v54, %v749_v10  ;;  %v831_v0 = vmax.f32 %v815_v50, 0.0  ;;  %v817_v6 = vadd.f32 %v796_v20, %v753_v5  ;;  %p1216_p4 = pnand %p1215_p3, %p1209_p0 }
 0x3e2   :  { %v824_v4 = vmax.f32 %v808_v22, 0.0  ;;  %v810_v24 = vadd.f32 %v801_v43, %v746_v25  ;;  %v825_v46 = vmax.f32 %v809_v40, 0.0  ;;  %v832_v26 = vmax.f32 %v816_v28, 0.0 }
 0x3e3   :  { %v829_v51 = vmax.f32 %v813_v49, 0.0  ;;  %v818_v56 = vadd.f32 %v801_v43, %v754_v53  ;;  %v833_v60 = vmax.f32 %v817_v6, 0.0 }
 0x3e4   :  { %v837_v45 = vpack.c.bf16 %v824_v4, %v823_v44  ;;  %v826_v16 = vmax.f32 %v810_v24, 0.0  ;;  %v841_v2 = vpack.c.bf16 %v832_v26, %v831_v0 }
 0x3e5   :  { %v840_v1 = vpack.c.bf16 %v830_v11, %v829_v51  ;;  %v834_v54 = vmax.f32 %v818_v56, 0.0 }
 0x3e6   :  { %v838_v47 = vpack.c.bf16 %v826_v16, %v825_v46  ;;  %1132 = vmatprep.mubr.msk.bf16.mxu1 %vm522_vm1, %v837_v45 }
 0x3e7   :  { %v842_v63 = vpack.c.bf16 %v834_v54, %v833_v60 }
 0x3e8   :  { %1133 = vmatmul.mubr.msk.bf16.gmra.mrb[20].mxu1 %vm522_vm1, %v838_v47 }
 0x3e9   :  { %1136 = vmatprep.mubr.msk.bf16.mxu1 %vm522_vm1, %v839_v48 }
 0x3f0   :  { %1137 = vmatmul.mubr.msk.bf16.gmra.mrb[24].mxu1 %vm522_vm1, %v840_v1 }
 0x3f1   :  { %1140 = vmatprep.mubr.msk.bf16.mxu1 %vm522_vm1, %v841_v2 }
 0x3f8   :  { %1141 = vmatmul.mubr.msk.bf16.gmra.mrb[28].mxu1 %vm522_vm1, %v842_v63 }
 0x4ab   :  { %v1130_v7 = vpop.f32.mrb[16].mxu1 }
 0x4ac   :  { %v933_v8 = vadd.f32 %v1130_v7, %v1067_v18  ;;  %v924_v9 = vpop.f32.mrb[17].mxu1 }
 0x4ad   :  { %v925_v58 = vadd.f32 %v1067_v18, %v924_v9  ;;  %v1131_v52 = vpop.f32.mrb[18].mxu1 }
 0x4ae   :  { %989 = vst [vmem:[#allocation2 + $0x10] sm:$0xff] %v933_v8  ;;  %v936_v12 = vadd.f32 %v1131_v52, %v1067_v18  ;;  %v927_v59 = vpop.f32.mrb[19].mxu1 }
 0x4af   :  { %987 = vst [vmem:[#allocation2] sm:$0xff] %v925_v58  ;;  %v928_v13 = vadd.f32 %v1067_v18, %v927_v59 }
 0x4b0   :  { %990 = vst [vmem:[#allocation2 + $0x18] sm:$0xff] %v936_v12 }
 0x4b1   :  { %988 = vst [vmem:[#allocation2 + $0x8] sm:$0xff] %v928_v13 }
 0x4bb   :  { %v1134_v14 = vpop.f32.mrb[20].mxu1 }
 0x4bc   :  { %v949_v15 = vadd.f32 %v1134_v14, %v1067_v18  ;;  %v940_v3 = vpop.f32.mrb[21].mxu1 }
 0x4bd   :  { %v941_v19 = vadd.f32 %v1067_v18, %v940_v3  ;;  %v1135_v21 = vpop.f32.mrb[22].mxu1 }
 0x4be   :  { %993 = vst [vmem:[#allocation2 + $0x30] sm:$0xff] %v949_v15  ;;  %v952_v31 = vadd.f32 %v1135_v21, %v1067_v18  ;;  %v943_v57 = vpop.f32.mrb[23].mxu1 }
 0x4bf   :  { %991 = vst [vmem:[#allocation2 + $0x20] sm:$0xff] %v941_v19  ;;  %v944_v55 = vadd.f32 %v1067_v18, %v943_v57 }
 0x4c0   :  { %994 = vst [vmem:[#allocation2 + $0x38] sm:$0xff] %v952_v31 }
 0x4c1   :  { %992 = vst [vmem:[#allocation2 + $0x28] sm:$0xff] %v944_v55 }
 0x4c3   :  { %v1138_v29 = vpop.f32.mrb[24].mxu1 }
 0x4c4   :  { %v965_v23 = vadd.f32 %v1138_v29, %v1067_v18  ;;  %v956_v38 = vpop.f32.mrb[25].mxu1 }
 0x4c5   :  { %v957_v33 = vadd.f32 %v1067_v18, %v956_v38  ;;  %v1139_v41 = vpop.f32.mrb[26].mxu1 }
 0x4c6   :  { %997 = vst [vmem:[#allocation2 + $0x50] sm:$0xff] %v965_v23  ;;  %v968_v61 = vadd.f32 %v1139_v41, %v1067_v18  ;;  %v959_v62 = vpop.f32.mrb[27].mxu1 }
 0x4c7   :  { %995 = vst [vmem:[#allocation2 + $0x40] sm:$0xff] %v957_v33  ;;  %v960_v34 = vadd.f32 %v1067_v18, %v959_v62 }
 0x4c8   :  { %998 = vst [vmem:[#allocation2 + $0x58] sm:$0xff] %v968_v61 }
 0x4c9   :  { %996 = vst [vmem:[#allocation2 + $0x48] sm:$0xff] %v960_v34 }
 0x4cb   :  { %v1142_v35 = vpop.f32.mrb[28].mxu1 }
 0x4cc   :  { %v981_v37 = vadd.f32 %v1142_v35, %v1067_v18  ;;  %v972_v20 = vpop.f32.mrb[29].mxu1 }
 0x4cd   :  { %v973_v25 = vadd.f32 %v1067_v18, %v972_v20  ;;  %v1143_v22 = vpop.f32.mrb[30].mxu1 }
 0x4ce   :  { %1001 = vst [vmem:[#allocation2 + $0x70] sm:$0xff] %v981_v37  ;;  %v984_v39 = vadd.f32 %v1143_v22, %v1067_v18  ;;  %v975_v40 = vpop.f32.mrb[31].mxu1 }
 0x4cf   :  { %999 = vst [vmem:[#allocation2 + $0x60] sm:$0xff] %v973_v25  ;;  %v976_v43 = vadd.f32 %v1067_v18, %v975_v40 }
 0x4d0   :  { %1002 = vst [vmem:[#allocation2 + $0x78] sm:$0xff] %v984_v39 }
 0x4d1   :  { %1000 = vst [vmem:[#allocation2 + $0x68] sm:$0xff] %v976_v43 }
 0x4d2   :  { %1219 = shalt.err (!%p1216_p4)
}
 0x4d3   :  { %s1220_s24 = scalar_lea.hbm %s1694_s8, 2048 }
 0x4d4   :  { %p1221_p5 = scmp.ne.s32.totalorder %s1694_s8, %s1220_s24  ;;  %p1224_p6 = scmp.lt.u32.totalorder %s1220_s24, %s1694_s8 }
 0x4d6   :  { %p1226_p7 = pnand %p1224_p6, %p1221_p5 }
 0x4d8   :  { %1229 = shalt.err (!%p1226_p7)
}
 0x4d9   :  { %s1234_s29 = smov 128   ;;  %s1235_s30 = smov 8  }
 0x4da   :  { %1014 = dma.vmem_to_hbm [thread:$0]  %s1009_s22, 2048, %s1694_s8, [#allocation3], %s1234_s29, %s1234_s29, %s1235_s30  }
 0x4db   :  { %1230 = dma.done.wait [#allocation3], 2048  }
 0x4dc   :  { %1231 = vsyncadd [#allocation3], 4294965248 }
 0x4dd   :  { %1018 = vsyncpa [#allocation3], 1 }

</bundles_post_ra>
